<compile_context>
chip_gen: v7x
topology: tpu7x:2x2x1
jax: 0.10.0
libtpu: 0.0.40
codegen_flags: <defaults>
</compile_context>

<pallas_src>
import jax
import jax.numpy as jnp
from jax.experimental import pallas as pl
from jax.experimental.pallas import tpu as pltpu


# ----------------------------- Pallas kernel -------------------------------

def multilink_kernel(xi_ref, xj_ref, w_ref, b_ref, o_ref):
    """Fused: sigmoid((x_i * x_j) @ W + b) for one row tile."""
    # x = x_i * x_j   (elementwise, VPU)
    h = xi_ref[...] * xj_ref[...]
    # Linear: h @ W  (W stored [in, out]); accumulate in f32 on the MXU.
    y = jnp.dot(h, w_ref[...], preferred_element_type=jnp.float32)
    y = y + b_ref[...]
    # sigmoid (EUP), stored lane-dense in the (bf16) output dtype.
    o_ref[...] = jax.nn.sigmoid(y).astype(o_ref.dtype)


# ------------------------------- wrapper ------------------------------------

def _round_up(x, m):
    return ((x + m - 1) // m) * m


def _pad2(a, rows, cols):
    pr, pc = rows - a.shape[0], cols - a.shape[1]
    if pr or pc:
        a = jnp.pad(a, ((0, pr), (0, pc)))
    return a


def multi_link_predictor(x_i, x_j, w, b, *, tile_rows=1024, out_dtype=jnp.bfloat16):
    """sigmoid((x_i * x_j) @ W + b).

    x_i, x_j: [E, Cin]   (bf16 preferred; memory-bound kernel)
    w:        [Cin, Cout] (PyTorch weight.T)
    b:        [1, Cout]   (f32)
    Returns [E, Cout] in `out_dtype`.
    tile_rows: sweep 512-2048 per generation (1024 is a good v5e/v6e default;
    v7x can go 2048 -- still only a few MiB of VMEM at 128 lanes).
    """
    e, cin = x_i.shape
    cout = w.shape[1]

    # Lane-dense channel padding (last dims multiples of 128 -> unmasked vst,
    # full MXU columns); rows padded to a multiple-of-8 tile.
    cin_p = _round_up(cin, 128)
    cout_p = _round_up(cout, 128)
    tile = _round_up(min(tile_rows, _round_up(e, 8)), 8)
    e_p = _round_up(e, tile)

    x_i_p = _pad2(x_i, e_p, cin_p)
    x_j_p = _pad2(x_j, e_p, cin_p)
    w_p = _pad2(w, cin_p, cout_p)
    b_p = _pad2(b, 1, cout_p)

    in_bytes = jnp.dtype(x_i.dtype).itemsize
    out_bytes = jnp.dtype(out_dtype).itemsize
    cost = pl.CostEstimate(
        flops=2 * e_p * cin_p * cout_p + e_p * cin_p,
        transcendentals=e_p * cout_p,
        bytes_accessed=(2 * e_p * cin_p + cin_p * cout_p) * in_bytes
                       + e_p * cout_p * out_bytes + cout_p * 4,
    )

    out = pl.pallas_call(
        multilink_kernel,
        out_shape=jax.ShapeDtypeStruct((e_p, cout_p), out_dtype),
        grid=(e_p // tile,),
        in_specs=[
            pl.BlockSpec((tile, cin_p), lambda i: (i, 0)),    # x_i row tile
            pl.BlockSpec((tile, cin_p), lambda i: (i, 0)),    # x_j row tile
            pl.BlockSpec((cin_p, cout_p), lambda i: (0, 0)),  # W resident
            pl.BlockSpec((1, cout_p), lambda i: (0, 0)),      # bias resident
        ],
        out_specs=pl.BlockSpec((tile, cout_p), lambda i: (i, 0)),
        compiler_params=pltpu.CompilerParams(
            dimension_semantics=("parallel",),                # megacore shard
        ),
        cost_estimate=cost,
    )(x_i_p, x_j_p, w_p, b_p)

    # Slice padding back off to match PyTorch output shape exactly.
    return out[:e, :cout]


# --------------------------------- main --------------------------------------

if __name__ == "__main__":
    # Small, realistic link-predictor shapes: odd edge count (exercises row
    # padding), narrow channels (exercises lane padding), out_channels = 1.
    E = 203          # number of (i, j) link pairs
    IN_C = 64        # in_channels
    OUT_C = 1        # out_channels (typical link predictor)
    # hidden_channels / num_layers / dropout are unused by this module's forward.

    root = jax.random.PRNGKey(0)
    k_i, k_j, k_w, k_b = jax.random.split(root, 4)

    x_i = jax.random.normal(k_i, (E, IN_C), jnp.float32).astype(jnp.bfloat16)
    x_j = jax.random.normal(k_j, (E, IN_C), jnp.float32).astype(jnp.bfloat16)

    # PyTorch Linear stores weight as [out, in]; transpose to [in, out] for x @ W.
    w_torch = jax.random.normal(k_w, (OUT_C, IN_C), jnp.float32) * 0.1
    w = w_torch.T.astype(jnp.bfloat16)
    b = (0.05 * jax.random.normal(k_b, (1, OUT_C), jnp.float32)).astype(jnp.float32)

    # Small tile here purely to exercise a multi-step grid; production default
    # is tile_rows=1024 (sweep 512-2048 per generation).
    out = multi_link_predictor(x_i, x_j, w, b, tile_rows=64)
    out = jax.block_until_ready(out)

    # Pure-JAX reference on the same (bf16-operand, f32-accumulate) path.
    ref = jax.nn.sigmoid(
        jnp.dot(x_i * x_j, w, preferred_element_type=jnp.float32) + b)

    assert out.shape == (E, OUT_C), out.shape
    out_f32 = out.astype(jnp.float32)
    assert jnp.all(jnp.isfinite(out_f32))
    assert jnp.allclose(out_f32, ref, atol=2e-2, rtol=2e-2)
    print("KERNEL_OK")
</pallas_src>

<mosaic_0001>
module attributes {stable_mosaic.version = 11 : i64} {
  func.func @multilink_kernel(%arg0: i32, %arg1: memref<64x128xbf16, #tpu.memory_space<vmem>>, %arg2: memref<64x128xbf16, #tpu.memory_space<vmem>>, %arg3: memref<128x128xbf16, #tpu.memory_space<vmem>>, %arg4: memref<1x128xf32, #tpu.memory_space<vmem>>, %arg5: memref<64x128xbf16, #tpu.memory_space<vmem>>) attributes {dimension_semantics = [#tpu.dimension_semantics<parallel>], iteration_bounds = array<i64: 4>, scalar_prefetch = 0 : i64, scratch_operands = 0 : i64, tpu.core_type = #tpu.core_type<tc>, window_params = [{transform_indices = @transform_0, window_bounds = array<i64: 64, 128>}, {transform_indices = @transform_1, window_bounds = array<i64: 64, 128>}, {pipeline_mode = #tpu.pipeline_mode<synchronous>, transform_indices = @transform_2, window_bounds = array<i64: 128, 128>}, {pipeline_mode = #tpu.pipeline_mode<synchronous>, transform_indices = @transform_3, window_bounds = array<i64: 1, 128>}, {transform_indices = @transform_4, window_bounds = array<i64: 64, 128>}]} {
    %c0 = arith.constant 0 : index
    %c0_0 = arith.constant 0 : index
    %0 = vector.load %arg1[%c0, %c0_0] : memref<64x128xbf16, #tpu.memory_space<vmem>>, vector<64x128xbf16>
    %c0_1 = arith.constant 0 : index
    %c0_2 = arith.constant 0 : index
    %1 = vector.load %arg2[%c0_1, %c0_2] : memref<64x128xbf16, #tpu.memory_space<vmem>>, vector<64x128xbf16>
    %2 = arith.mulf %0, %1 : vector<64x128xbf16>
    %c0_3 = arith.constant 0 : index
    %c0_4 = arith.constant 0 : index
    %3 = vector.load %arg3[%c0_3, %c0_4] : memref<128x128xbf16, #tpu.memory_space<vmem>>, vector<128x128xbf16>
    %cst = arith.constant dense<0.000000e+00> : vector<64x128xf32>
    %4 = tpu.matmul %2, %3, %cst {dimension_numbers = #tpu.dot_dimension_numbers<[1], [0], [0], [1], [0, 0, 1, 1], [], []>} : vector<64x128xbf16>, vector<128x128xbf16>, vector<64x128xf32> -> vector<64x128xf32>
    %c0_5 = arith.constant 0 : index
    %c0_6 = arith.constant 0 : index
    %5 = vector.load %arg4[%c0_5, %c0_6] : memref<1x128xf32, #tpu.memory_space<vmem>>, vector<1x128xf32>
    %6 = vector.broadcast %5 : vector<1x128xf32> to vector<64x128xf32>
    %7 = arith.addf %4, %6 : vector<64x128xf32>
    %8 = arith.negf %7 : vector<64x128xf32>
    %9 = math.exp %8 : vector<64x128xf32>
    %cst_7 = arith.constant 1.000000e+00 : f32
    %10 = vector.broadcast %cst_7 : f32 to vector<64x128xf32>
    %11 = arith.addf %10, %9 : vector<64x128xf32>
    %12 = arith.divf %10, %11 : vector<64x128xf32>
    %13 = arith.truncf %12 : vector<64x128xf32> to vector<64x128xbf16>
    %c0_8 = arith.constant 0 : index
    %c0_9 = arith.constant 0 : index
    %14 = vector.load %arg5[%c0_8, %c0_9] : memref<64x128xbf16, #tpu.memory_space<vmem>>, vector<64x128xbf16>
    tpu.vector_store %arg5[%c0_8, %c0_9], %13 {strides = array<i32>} : memref<64x128xbf16, #tpu.memory_space<vmem>>, vector<64x128xbf16>,
    return
  }
  func.func @transform_0(%arg0: i32) -> (i32, i32) {
    %c0_i32 = arith.constant 0 : i32
    %c0_i32_0 = arith.constant 0 : i32
    return %arg0, %c0_i32 : i32, i32
  }
  func.func @transform_1(%arg0: i32) -> (i32, i32) {
    %c0_i32 = arith.constant 0 : i32
    %c0_i32_0 = arith.constant 0 : i32
    return %arg0, %c0_i32 : i32, i32
  }
  func.func @transform_2(%arg0: i32) -> (i32, i32) {
    %c0_i32 = arith.constant 0 : i32
    %c0_i32_0 = arith.constant 0 : i32
    %c0_i32_1 = arith.constant 0 : i32
    return %c0_i32, %c0_i32_0 : i32, i32
  }
  func.func @transform_3(%arg0: i32) -> (i32, i32) {
    %c0_i32 = arith.constant 0 : i32
    %c0_i32_0 = arith.constant 0 : i32
    %c0_i32_1 = arith.constant 0 : i32
    return %c0_i32, %c0_i32_0 : i32, i32
  }
  func.func @transform_4(%arg0: i32) -> (i32, i32) {
    %c0_i32 = arith.constant 0 : i32
    %c0_i32_0 = arith.constant 0 : i32
    return %arg0, %c0_i32 : i32, i32
  }
}

</mosaic_0001>

<bundles_post_ra>
// kernel: tpu_custom_call.1
= control target key start
LH: loop header
LB: loop body
LE: loop exit
PB: predicated region body
PF: predicated region fallthrough
CT: control target
= control target key end

     0   :  { %s1375_s0 = inlined_call_operand.hbm [shape: bf16[256,128], index: 0, kind: input, shape index: {}]   ;;  %s1376_s1 = inlined_call_operand.hbm [shape: bf16[256,128], index: 1, kind: input, shape index: {}]   ;;  %s1377_s2 = inlined_call_operand.hbm [shape: bf16[128,128], index: 2, kind: input, shape index: {}]   ;;  %s1378_s3 = inlined_call_operand.vmem [shape: f32[1,128], index: 3, kind: input, shape index: {}]   ;;  %s1379_s4 = inlined_call_operand.hbm [shape: bf16[256,128], index: 4, kind: output, shape index: {}]  }
   0x1   :  { %1387 = sst [smem:[#allocation14_spill]] %s1375_s0 }
   0x2   :  { %1388 = sst [smem:[#allocation15_spill]] %s1377_s2 }
   0x3   :  { %9 = vsyncpa [#allocation3], 0 }
   0x4   :  { %11 = vsyncpa [#allocation3 + $0x1], 0 }
   0x5   :  { %12 = vsyncpa [#allocation6], 0 }
   0x6   :  { %14 = vsyncpa [#allocation6 + $0x1], 0 }
   0x7   :  { %15 = vsyncpa [#allocation4], 0 }
   0x8   :  { %17 = vsyncpa [#allocation4 + $0x1], 0  ;;  %s1103_s15 = smov 0   ;;  %s1105_s16 = smov 0  }
   0x9   :  { %s1107_s17 = smov 0   ;;  %s1109_s18 = smov 0  }
   0xa LB: > { %s1124_s19 = sadd.s32 4294967295, %s1068_s18   ;;  %s665_s20 = sadd.s32 4294967294, %s1068_s18   ;;  %s1068_s18 = sphi %s1109_s18, %s1410_s18   ;;  %s1064_s17 = sphi %s1107_s17, %s1409_s17   ;;  %s1060_s16 = sphi %s1105_s16, %s1408_s16   ;;  %s1056_s15 = sphi %s1103_s15, %s1407_s15  }
   0xb   : > { %p43_p0 = scmp.ne.s32.totalorder %s1060_s16, %s1056_s15  ;;  %p1380_p1 = scmp.eq.s32.totalorder %s1124_s19, 0 }
   0xc   : > { %p141_p3 = scmp.eq.s32.totalorder %s665_s20, 3  ;;  %p666_p5 = scmp.ge.s32.totalorder %s1068_s18, 1 }
   0xd   : > { %p1133_p4 = por %p1380_p1, %p43_p0  ;;  %p148_p7 = scmp.lt.s32.totalorder %s1068_s18, 5 }
   0xe   : > { %p1138_p6 = por %p141_p3, %p43_p0  ;;  %s1070_s24 = smov [#allocation7]  }
   0xf   : > { %s1389_s21 = scalar_select %p1133_p4, 1, 0 }
  0x10   : > { %s1390_s22 = scalar_select %p1138_p6, 1, 0 }
  0x11   : > { %p1143_p8 = pnand %p666_p5, %p148_p7  ;;  %s160_s25 = sshll.u32 %s1070_s24, 4  ;;  %s161_s25 = int_to_ptr.vmem [resolvable:$true] %s160_s25 }
  0x12   : > { %s1156_s27 = sadd.s32 1, %s1068_s18   ;;  %s30_s28 = sadd.s32 1, %s1064_s17 }
  0x13   : > { %s1391_s23 = scalar_select %p1143_p8, 1, 0 }
  0x14   : > { %p810_p9 = pneg %p1143_p8  ;;  %s27_s29 = ssub.s32 %s1068_s18, %s1156_s27 }
  0x15   : > { %s1393_s2 = sld [smem:[#allocation15_spill]] }
  0x16   : > { %p1151_p10 = pnand %p810_p9, %p1380_p1 }
  0x18   : > { %p908_p12 = pneg %p1151_p10 }
  0x1b   : > { %s906_s6 = scalar_lea.hbm %s1393_s2, 1024 }
  0x1c   : > { %p907_p11 = scmp.ne.s32.totalorder %s1393_s2, %s906_s6  ;;  %p913_p3 = scmp.lt.u32.totalorder %s906_s6, %s1393_s2 }
  0x1e   : > { %p909_p13 = pnand %p908_p12, %p907_p11 }
  0x20   : > { %p910_p0 = pneg %p909_p13 }
  0x22   : > { %p915_p5 = pnand %p913_p3, %p910_p0 }
  0x24   : > { %918 = shalt.err (!%p915_p5)
}
  0x25   : > { %s919_s11 = scalar_lea.vmem %s161_s25, 1024  ;;  %p927_p2 = scmp.lt.s32.totalorder %s161_s25, %s161_s25 }
  0x26   : > { %p920_p7 = scmp.ne.s32.totalorder %s161_s25, %s919_s11  ;;  %p928_p6 = scmp.lt.s32.totalorder %s919_s11, %s919_s11 }
  0x28   : > { %p922_p9 = pnand %p920_p7, %p908_p12  ;;  %p929_p4 = por %p928_p6, %p927_p2 }
  0x2a   : > { %p923_p1 = pneg %p922_p9 }
  0x2c   : > { %p930_p8 = pnand %p929_p4, %p923_p1 }
  0x2e   : > { %933 = shalt.err (!%p930_p8)
}
  0x2f   : > { %s1383_s12 = smov 64   ;;  %s1385_s13 = smov 4  }
  0x30   : > { %813 = dma.hbm_to_vmem [thread:$0]  (!%p1151_p10), %s1393_s2, 1024, %s161_s25, [#allocation6], %s1383_s12, %s1383_s12, %s1385_s13  }
  0x31   : > { %p28_p1 = scmp.eq.s32.totalorder %s27_s29, 0  ;;  %p37_p2 = scmp.ne.s32.totalorder %s1064_s17, %s1060_s16 }
  0x32   : > { %p38_p4 = scmp.eq.s32.totalorder %s1068_s18, 0  ;;  %p826_p6 = scmp.lt.s32.totalorder %s1068_s18, 4 }
  0x33   : > { %s1185_s24 = scalar_select %p28_p1, %s1064_s17, %s30_s28  }
  0x34   : > { %p39_p8 = por %p38_p4, %p37_p2  ;;  %p1395_p11 = scmp.eq.s32.totalorder %s1124_s19, 3 }
  0x35   : > { %1394 = sst [smem:[#allocation13_spill]] %s1185_s24  ;;  %s177_s26 = sand.u32 1, %s1064_s17  }
  0x36   : > { %p1189_p12 = por %p1395_p11, %p37_p2  ;;  %s714_s5 = sshll.u32 %s1068_s18, 9 }
  0x37   : > { %s1195_s6 = sshll.u32 %s177_s26, 5  ;;  %s1397_s0 = sld [smem:[#allocation14_spill]] }
  0x38   : > { %s181_s28 = scalar_lea.vmem [#allocation2], %s1195_s6  ;;  %p1203_p10 = pnand %p826_p6, %p39_p8 }
  0x39   : > { %s188_s29 = sshll.u32 %s181_s28, 4  ;;  %s1212_s14 = scalar_lea.hbm %s1376_s1, %s714_s5  ;;  %s1207_s29 = int_to_ptr.vmem [resolvable:$true] %s188_s29 }
  0x3a   : > { %s1214_s20 = scalar_lea.sflag [#allocation3], %s177_s26  ;;  %p936_p0 = pneg %p1203_p10 }
  0x3d   : > { %s1200_s25 = scalar_lea.hbm %s1397_s0, %s714_s5  ;;  %s939_s12 = scalar_lea.hbm %s1397_s0, 2048 }
  0x3e   : > { %s934_s7 = scalar_lea.hbm %s1200_s25, 512  ;;  %p940_p7 = scmp.lt.u32.totalorder %s1200_s25, %s1397_s0 }
  0x3f   : > { %p935_p13 = scmp.ne.s32.totalorder %s1200_s25, %s934_s7  ;;  %p941_p9 = scmp.lt.u32.totalorder %s939_s12, %s934_s7 }
  0x40   : > { %p943_p2 = scmp.lt.u32.totalorder %s934_s7, %s1200_s25 }
  0x41   : > { %p937_p3 = pnand %p936_p0, %p935_p13  ;;  %p942_p1 = por %p941_p9, %p940_p7 }
  0x43   : > { %p938_p5 = pneg %p937_p3  ;;  %p944_p4 = por %p943_p2, %p942_p1 }
  0x45   : > { %p945_p6 = pnand %p944_p4, %p938_p5 }
  0x47   : > { %948 = shalt.err (!%p945_p6)
}
  0x48   : > { %s949_s26 = scalar_lea.vmem %s1207_s29, 512  ;;  %s1073_s5 = smov [#allocation2]  }
  0x49   : > { %p950_p8 = scmp.ne.s32.totalorder %s1207_s29, %s949_s26  ;;  %s954_s10 = sshll.u32 %s1073_s5, 4  ;;  %s955_s10 = int_to_ptr.vmem [resolvable:$false] %s954_s10 }
  0x4a   : > { %s956_s2 = scalar_lea.vmem %s955_s10, 1024  ;;  %p957_p3 = scmp.lt.s32.totalorder %s1207_s29, %s955_s10 }
  0x4b   : > { %p952_p11 = pnand %p950_p8, %p936_p0  ;;  %p958_p7 = scmp.lt.s32.totalorder %s956_s2, %s949_s26 }
  0x4d   : > { %p953_p13 = pneg %p952_p11  ;;  %p959_p9 = por %p958_p7, %p957_p3 }
  0x4f   : > { %p960_p1 = pnand %p959_p9, %p953_p13 }
  0x51   : > { %963 = shalt.err (!%p960_p1)
}
  0x52   : > { %s1399_s12 = smov 4   ;;  %s1400_s13 = smov 64  }
  0x53   : > { %817 = dma.hbm_to_vmem [thread:$0]  (!%p1203_p10), %s1200_s25, 512, %s1207_s29, %s1214_s20, %s1400_s13, %s1400_s13, %s1399_s12  }
  0x54   : > { %s202_s11 = scalar_lea.vmem [#allocation5], %s1195_s6  ;;  %s198_s8 = sand.u32 1, %s1068_s18  }
  0x55   : > { %s209_s7 = sshll.u32 %s202_s11, 4  ;;  %s1249_s28 = scalar_lea.sflag [#allocation6], %s198_s8  ;;  %s1247_s7 = int_to_ptr.vmem [resolvable:$true] %s209_s7 }
  0x56   : > { %s964_s26 = scalar_lea.hbm %s1212_s14, 512  ;;  %s969_s2 = scalar_lea.hbm %s1376_s1, 2048 }
  0x57   : > { %p965_p5 = scmp.ne.s32.totalorder %s1212_s14, %s964_s26  ;;  %p970_p6 = scmp.lt.u32.totalorder %s1212_s14, %s1376_s1 }
  0x58   : > { %p971_p8 = scmp.lt.u32.totalorder %s969_s2, %s964_s26  ;;  %p973_p13 = scmp.lt.u32.totalorder %s964_s26, %s1212_s14 }
  0x59   : > { %p967_p2 = pnand %p965_p5, %p936_p0 }
  0x5a   : > { %p972_p11 = por %p971_p8, %p970_p6 }
  0x5b   : > { %p968_p4 = pneg %p967_p2 }
  0x5c   : > { %p974_p3 = por %p973_p13, %p972_p11 }
  0x5e   : > { %p975_p7 = pnand %p974_p3, %p968_p4 }
  0x60   : > { %978 = shalt.err (!%p975_p7)
}
  0x61   : > { %s979_s6 = scalar_lea.vmem %s1247_s7, 512  ;;  %s1074_s25 = smov [#allocation5]  }
  0x62   : > { %p980_p9 = scmp.ne.s32.totalorder %s1247_s7, %s979_s6  ;;  %s984_s29 = sshll.u32 %s1074_s25, 4  ;;  %s985_s29 = int_to_ptr.vmem [resolvable:$false] %s984_s29 }
  0x63   : > { %s986_s0 = scalar_lea.vmem %s985_s29, 1024  ;;  %p987_p2 = scmp.lt.s32.totalorder %s1247_s7, %s985_s29 }
  0x64   : > { %p982_p1 = pnand %p980_p9, %p936_p0  ;;  %p988_p6 = scmp.lt.s32.totalorder %s986_s0, %s979_s6 }
  0x66   : > { %p983_p5 = pneg %p982_p1  ;;  %p989_p8 = por %p988_p6, %p987_p2 }
  0x68   : > { %p990_p11 = pnand %p989_p8, %p983_p5 }
  0x6a   : > { %993 = shalt.err (!%p990_p11)
}
  0x6b   : > { %820 = dma.hbm_to_vmem [thread:$0]  (!%p1203_p10), %s1212_s14, 512, %s1247_s7, %s1249_s28, %s1400_s13, %s1400_s13, %s1399_s12  }
  0x6c   : > { %p1401_p0 = scmp.ne.s32.totalorder %s1391_s23, 0 }
  0x6d   : > { %s1281_s24 = sand.u32 (!%p1401_p0), 1, %s1060_s16   ;;  %p1402_p4 = scmp.ne.s32.totalorder (!%p1401_p0), %s1389_s21, 0 }
  0x6e   : > { %221 = sbr.rel (%p1401_p0) target bundleno = 421 (0x1a5), region = 36  ;;  %s1284_s20 = sshll.u32 (!%p1401_p0), %s1281_s24, 5 }
  0x6f   : > { %s224_s9 = scalar_lea.sflag (!%p1401_p0), [#allocation3], %s1281_s24  ;;  %s1288_s11 = scalar_lea.vmem (!%p1401_p0), [#allocation2], %s1284_s20 }
  0x75   : > { %1039 = dma.done.wait (%p1402_p4), %s224_s9, 512  }
  0x76   : > { %1041 = vsyncadd (%p1402_p4), %s224_s9, 4294966784  ;;  %s232_s23 = sand.u32 1, %s1124_s19   ;;  %s1296_s12 = scalar_lea.vmem [#allocation5], %s1284_s20 }
  0x77   : > { %s233_s14 = scalar_lea.sflag [#allocation6], %s232_s23 }
  0x78   : > { %1043 = dma.done.wait (%p1402_p4), %s233_s14, 512  }
  0x79   : > { %1045 = vsyncadd (%p1402_p4), %s233_s14, 4294966784  ;;  %p1403_p10 = scmp.eq.s32.totalorder %s1124_s19, 0 }
  0x7b   : > { %1047 = dma.done.wait (%p1403_p10), [#allocation6], 1024   ;;  %p1404_p13 = pmov %p1403_p10 }
  0x7c   : > { %v866_v0 = vld [vmem:[#allocation7] sm:$0xff]   ;;  %v867_v1 = vld [vmem:[#allocation7 + $0x8] sm:$0xff]   ;;  %v868_v2 = vld [vmem:[#allocation7 + $0x10] sm:$0xff]   ;;  %s724_s7 = sshll.u32 %s1124_s19, 9  ;;  %s269_s8 = scalar_lea.vmem [#allocation8], %s1284_s20 }
  0x7d   : > { %1049 = vsyncadd (%p1404_p13), [#allocation6], 4294966272  ;;  %760 = vmatprep.subr.bf16.mxu0 %v866_v0  ;;  %784 = vmatprep.subr.bf16.mxu1 %v866_v0  ;;  %v869_v3 = vld [vmem:[#allocation7 + $0x18] sm:$0xff]   ;;  %v274_v4 = vld [vmem:[%s1288_s11] sm:$0xf]  ;;  %s560_s28 = sshll.u32 %s269_s8, 4  ;;  %s1330_s10 = scalar_lea.hbm %s1379_s4, %s724_s7  ;;  %s1332_s28 = int_to_ptr.vmem [resolvable:$true] %s560_s28 }
  0x7e   : > { %761 = vmatpush3.bf16.msra.mxu0 %v866_v0  ;;  %792 = vmatpush3.bf16.msra.mxu1 %v866_v0  ;;  %v275_v5 = vld [vmem:[%s1288_s11 + $0x4] sm:$0xf]  ;;  %v282_v6 = vld [vmem:[%s1296_s12] sm:$0xf]  ;;  %v278_v9 = vld [vmem:[%s1288_s11 + $0x10] sm:$0xf] }
  0x7f   : > { %762 = vmatprep.subr.bf16.mxu0 %v867_v1  ;;  %785 = vmatprep.subr.bf16.mxu1 %v867_v1  ;;  %v283_v7 = vld [vmem:[%s1296_s12 + $0x4] sm:$0xf]  ;;  %v290_v8 = vmul.bf16 %v282_v6, %v274_v4  ;;  %v279_v10 = vld [vmem:[%s1288_s11 + $0x14] sm:$0xf]  ;;  %v286_v12 = vld [vmem:[%s1296_s12 + $0x10] sm:$0xf] }
  0x80   : > { %v291_v11 = vmul.bf16 %v283_v7, %v275_v5  ;;  %v287_v13 = vld [vmem:[%s1296_s12 + $0x14] sm:$0xf]  ;;  %v294_v14 = vmul.bf16 %v286_v12, %v278_v9  ;;  %v870_v16 = vld [vmem:[#allocation7 + $0x20] sm:$0xff]   ;;  %v871_v19 = vld [vmem:[#allocation7 + $0x28] sm:$0xff]   ;;  %s547_s19 = scalar_lea.sflag [#allocation4], %s1281_s24  ;;  %s994_s2 = scalar_lea.vmem %s1332_s28, 512 }
  0x81   : > { %v295_v15 = vmul.bf16 %v287_v13, %v279_v10  ;;  %v872_v20 = vld [vmem:[#allocation7 + $0x30] sm:$0xff]   ;;  %v276_v21 = vld [vmem:[%s1288_s11 + $0x8] sm:$0xf]  ;;  %v277_v22 = vld [vmem:[%s1288_s11 + $0xc] sm:$0xf]  ;;  %p995_p3 = scmp.ne.s32.totalorder %s1332_s28, %s994_s2  ;;  %s1075_s6 = smov [#allocation8]  }
  0x82   : > { %763 = vmatpush3.bf16.msra.mxu0 %v867_v1  ;;  %793 = vmatpush3.bf16.msra.mxu1 %v867_v1  ;;  %v681_v17 = vcombine.low %v290_v8, %v291_v11  ;;  %v284_v23 = vld [vmem:[%s1296_s12 + $0x8] sm:$0xf]  ;;  %v285_v24 = vld [vmem:[%s1296_s12 + $0xc] sm:$0xf]  ;;  %v280_v25 = vld [vmem:[%s1288_s11 + $0x18] sm:$0xf] }
  0x83   : > { %764 = vmatprep.subr.bf16.mxu0 %v868_v2  ;;  %786 = vmatprep.subr.bf16.mxu1 %v868_v2  ;;  %v683_v18 = vcombine.low %v294_v14, %v295_v15  ;;  %v281_v26 = vld [vmem:[%s1288_s11 + $0x1c] sm:$0xf]  ;;  %v288_v27 = vld [vmem:[%s1296_s12 + $0x18] sm:$0xf]  ;;  %v292_v30 = vmul.bf16 %v284_v23, %v276_v21  ;;  %v293_v31 = vmul.bf16 %v285_v24, %v277_v22  ;;  %v680_v36 = vld [vmem:[%s1378_s3] ss:$0 sm:$0xff]  ;;  %p996_p7 = pnand %p995_p3, %p1189_p12 }
  0x84   : > { %776 = vmatprep.mubr.bf16.mxu0 %v681_v17  ;;  %v289_v28 = vld [vmem:[%s1296_s12 + $0x1c] sm:$0xf]  ;;  %v296_v32 = vmul.bf16 %v288_v27, %v280_v25  ;;  %s998_s25 = sshll.u32 %s1075_s6, 4  ;;  %s999_s25 = int_to_ptr.vmem [resolvable:$false] %s998_s25 }
  0x85   : > { %780 = vmatprep.mubr.bf16.mxu1 %v683_v18  ;;  %v873_v29 = vld [vmem:[#allocation7 + $0x38] sm:$0xff]   ;;  %v297_v33 = vmul.bf16 %v289_v28, %v281_v26  ;;  %v682_v34 = vcombine.low %v292_v30, %v293_v31  ;;  %p997_p9 = pneg %p996_p7  ;;  %s1000_s29 = scalar_lea.vmem %s999_s25, 1024 }
  0x86   : > { %765 = vmatpush3.bf16.msra.mxu0 %v868_v2  ;;  %794 = vmatpush3.bf16.msra.mxu1 %v868_v2  ;;  %p1001_p1 = scmp.lt.s32.totalorder %s1332_s28, %s999_s25  ;;  %p1002_p5 = scmp.lt.s32.totalorder %s1000_s29, %s994_s2 }
  0x87   : > { %766 = vmatprep.subr.bf16.mxu0 %v869_v3  ;;  %787 = vmatprep.subr.bf16.mxu1 %v869_v3  ;;  %v684_v35 = vcombine.low %v296_v32, %v297_v33 }
  0x88   : > { %p1003_p2 = por %p1002_p5, %p1001_p1 }
  0x8a   : > { %767 = vmatpush3.bf16.msra.mxu0 %v869_v3  ;;  %795 = vmatpush3.bf16.msra.mxu1 %v869_v3  ;;  %p1004_p6 = pnand %p1003_p2, %p997_p9 }
  0x8b   : > { %768 = vmatprep.subr.bf16.mxu0 %v870_v16  ;;  %788 = vmatprep.subr.bf16.mxu1 %v870_v16 }
  0x8e   : > { %769 = vmatpush3.bf16.msra.mxu0 %v870_v16  ;;  %796 = vmatpush3.bf16.msra.mxu1 %v870_v16 }
  0x8f   : > { %770 = vmatprep.subr.bf16.mxu0 %v871_v19  ;;  %789 = vmatprep.subr.bf16.mxu1 %v871_v19 }
  0x92   : > { %771 = vmatpush3.bf16.msra.mxu0 %v871_v19  ;;  %797 = vmatpush3.bf16.msra.mxu1 %v871_v19 }
  0x93   : > { %772 = vmatprep.subr.bf16.mxu0 %v872_v20  ;;  %790 = vmatprep.subr.bf16.mxu1 %v872_v20 }
  0x96   : > { %773 = vmatpush3.bf16.msra.mxu0 %v872_v20  ;;  %798 = vmatpush3.bf16.msra.mxu1 %v872_v20 }
  0x97   : > { %774 = vmatprep.subr.bf16.mxu0 %v873_v29  ;;  %791 = vmatprep.subr.bf16.mxu1 %v873_v29 }
  0x9a   : > { %775 = vmatpush3.bf16.msra.mxu0 %v873_v29  ;;  %799 = vmatpush3.bf16.msra.mxu1 %v873_v29 }
  0x9d   : > { %777 = vmatmul.mubr.bf16.vlgmr.msra.gmra.mrb[0].mxu0 %v682_v34  ;;  %781 = vmatmul.mubr.bf16.vlgmr.msra.gmra.mrb[0].mxu1 %v684_v35 }
 0x170   : > { %v778_v37 = vpop.f32.mrb[0].mxu0  ;;  %v782_v38 = vpop.f32.mrb[0].mxu1 }
 0x171   : > { %v436_v39 = vadd.f32 %v778_v37, %v680_v36  ;;  %v452_v40 = vadd.f32 %v782_v38, %v680_v36  ;;  %v427_v41 = vpop.f32.mrb[1].mxu0  ;;  %v443_v42 = vpop.f32.mrb[1].mxu1 }
 0x172   : > { %v428_v43 = vadd.f32 %v680_v36, %v427_v41  ;;  %v444_v44 = vadd.f32 %v680_v36, %v443_v42  ;;  %v779_v45 = vpop.f32.mrb[2].mxu0  ;;  %v783_v46 = vpop.f32.mrb[2].mxu1 }
 0x173   : > { %v695_v47 = vmul.f32 -1.442695, %v436_v39  ;;  %v699_v48 = vmul.f32 -1.442695, %v452_v40  ;;  %v439_v49 = vadd.f32 %v779_v45, %v680_v36  ;;  %v455_v50 = vadd.f32 %v783_v46, %v680_v36  ;;  %v430_v51 = vpop.f32.mrb[3].mxu0  ;;  %v446_v52 = vpop.f32.mrb[3].mxu1 }
 0x174   : > { %v693_v53 = vmul.f32 -1.442695, %v428_v43  ;;  %v697_v54 = vmul.f32 -1.442695, %v444_v44  ;;  %v431_v55 = vadd.f32 %v680_v36, %v430_v51  ;;  %v447_v56 = vadd.f32 %v680_v36, %v446_v52 }
 0x175   : > { %874 = vpow2.f32 %v695_v47  ;;  %v696_v57 = vmul.f32 -1.442695, %v439_v49  ;;  %v700_v58 = vmul.f32 -1.442695, %v455_v50 }
 0x176   : > { %876 = vpow2.f32 %v699_v48  ;;  %v694_v59 = vmul.f32 -1.442695, %v431_v55  ;;  %v698_v60 = vmul.f32 -1.442695, %v447_v56 }
 0x177   : > { %878 = vpow2.f32 %v693_v53 }
 0x178   : > { %880 = vpow2.f32 %v697_v54 }
 0x179   : > { %882 = vpow2.f32 %v696_v57 }
 0x17a   : > { %884 = vpow2.f32 %v700_v58 }
 0x17b   : > { %886 = vpow2.f32 %v694_v59 }
 0x17c   : > { %888 = vpow2.f32 %v698_v60 }
 0x17f   : > { %v875_v61 = vpop.eup %874 }
 0x180   : > { %v877_v62 = vpop.eup %876  ;;  %v484_v63 = vadd.f32 1.0, %v875_v61 }
 0x181   : > { %v879_v0 = vpop.eup %878  ;;  %v488_v1 = vadd.f32 1.0, %v877_v62 }
 0x182   : > { %v881_v2 = vpop.eup %880  ;;  %890 = vrcp.f32 %v484_v63  ;;  %v482_v3 = vadd.f32 1.0, %v879_v0 }
 0x183   : > { %v883_v4 = vpop.eup %882  ;;  %892 = vrcp.f32 %v488_v1  ;;  %v486_v5 = vadd.f32 1.0, %v881_v2 }
 0x184   : > { %v885_v6 = vpop.eup %884  ;;  %894 = vrcp.f32 %v482_v3  ;;  %v485_v7 = vadd.f32 1.0, %v883_v4 }
 0x185   : > { %v887_v8 = vpop.eup %886  ;;  %896 = vrcp.f32 %v486_v5  ;;  %v489_v9 = vadd.f32 1.0, %v885_v6 }
 0x186   : > { %v889_v10 = vpop.eup %888  ;;  %898 = vrcp.f32 %v485_v7  ;;  %v483_v11 = vadd.f32 1.0, %v887_v8 }
 0x187   : > { %900 = vrcp.f32 %v489_v9  ;;  %v487_v12 = vadd.f32 1.0, %v889_v10 }
 0x188   : > { %902 = vrcp.f32 %v483_v11 }
 0x189   : > { %904 = vrcp.f32 %v487_v12 }
 0x18c   : > { %v891_v13 = vpop.eup %890 }
 0x18d   : > { %v893_v14 = vpop.eup %892 }
 0x18e   : > { %v895_v15 = vpop.eup %894 }
 0x18f   : > { %v897_v16 = vpop.eup %896 }
 0x190   : > { %v899_v17 = vpop.eup %898 }
 0x191   : > { %v901_v18 = vpop.eup %900  ;;  %v733_v19 = vpack.c.bf16 %v899_v17, %v891_v13 }
 0x192   : > { %v903_v20 = vpop.eup %902  ;;  %v743_v21 = vpack.c.bf16 %v901_v18, %v893_v14 }
 0x193   : > { %v905_v22 = vpop.eup %904  ;;  %745 = vst [vmem:[%s269_s8 + $0x8] sm:$0xff] %v733_v19   ;;  %v728_v23 = vpack.c.bf16 %v903_v20, %v895_v15 }
 0x194   : > { %747 = vst [vmem:[%s269_s8 + $0x18] sm:$0xff] %v743_v21   ;;  %v738_v24 = vpack.c.bf16 %v905_v22, %v897_v16 }
 0x195   : > { %729 = vst [vmem:[%s269_s8] sm:$0xff] %v728_v23  }
 0x196   : > { %746 = vst [vmem:[%s269_s8 + $0x10] sm:$0xff] %v738_v24  }
 0x197   : > { %1007 = shalt.err (!%p1004_p6)
}
 0x198   : > { %s1008_s0 = scalar_lea.hbm %s1330_s10, 512  ;;  %s1012_s11 = scalar_lea.hbm %s1379_s4, 2048 }
 0x199   : > { %p1009_p8 = scmp.ne.s32.totalorder %s1330_s10, %s1008_s0  ;;  %p1013_p4 = scmp.lt.u32.totalorder %s1330_s10, %s1379_s4 }
 0x19a   : > { %p1014_p10 = scmp.lt.u32.totalorder %s1012_s11, %s1008_s0  ;;  %p1016_p3 = scmp.lt.u32.totalorder %s1008_s0, %s1330_s10 }
 0x19b   : > { %p1010_p11 = pnand %p1009_p8, %p1189_p12 }
 0x19c   : > { %p1015_p13 = por %p1014_p10, %p1013_p4 }
 0x19d   : > { %p1011_p0 = pneg %p1010_p11 }
 0x19e   : > { %p1017_p7 = por %p1016_p3, %p1015_p13 }
 0x1a0   : > { %p1018_p9 = pnand %p1017_p7, %p1011_p0 }
 0x1a2   : > { %1021 = shalt.err (!%p1018_p9)
}
 0x1a3   : > { %s1076_s12 = smov 64   ;;  %s1077_s21 = smov 4  }
 0x1a4   : > { %808 = dma.vmem_to_hbm [thread:$0]  (%p1189_p12), %s1332_s28, 512, %s1330_s10, %s547_s19, %s1076_s12, %s1076_s12, %s1077_s21  }
 0x1a5 PF: > { %p828_p1 = scmp.ge.s32.totalorder %s1068_s18, 2  ;;  %s575_s13 = sand.u32 1, %s1056_s15  }
 0x1a6   : > { %p1405_p5 = scmp.ne.s32.totalorder %s1390_s22, 0  ;;  %s576_s7 = scalar_lea.sflag [#allocation4], %s575_s13 }
 0x1a8   : > { %p822_p2 = pnand %p828_p1, %p1405_p5 }
 0x1aa   : > { %1051 = dma.done.wait (!%p822_p2), %s576_s7, 512  }
 0x1ab   : > { %1053 = vsyncadd (!%p822_p2), %s576_s7, 4294966784  ;;  %s1406_s8 = sld [smem:[#allocation13_spill]]  ;;  %p20_p6 = scmp.ge.s32.totalorder %s1156_s27, 6  }
 0x1ac   : > { %s1407_s15 = smov %s1060_s16  ;;  %s1408_s16 = smov %s1064_s17 }
 0x1ad   : > { %s1410_s18 = smov %s1156_s27  ;;  %22 = sbr.rel (!%p20_p6) target bundleno = 10 (0xa), region = 98 }
 0x1b1   : > { %s1409_s17 = smov %s1406_s8 }
 0x1b4   :  { %581 = vsyncpa [#allocation3], 1 }
 0x1b5   :  { %583 = vsyncpa [#allocation3 + $0x1], 1 }
 0x1b6   :  { %584 = vsyncpa [#allocation6], 1 }
 0x1b7   :  { %586 = vsyncpa [#allocation6 + $0x1], 1 }
 0x1b8   :  { %587 = vsyncpa [#allocation4], 1 }
 0x1b9   :  { %589 = vsyncpa [#allocation4 + $0x1], 1 }

</bundles_post_ra>
